<compile_context>
chip_gen: v6e
topology: v6e:2x2x1
jax: 0.10.0
libtpu: 0.0.40
codegen_flags: <defaults>
</compile_context>

<pallas_src>
import jax
import jax.numpy as jnp
from jax.experimental import pallas as pl
from jax.experimental.pallas import tpu as pltpu

LANE = 128


def _round_up(n, m):
    return ((n + m - 1) // m) * m


def quantumnet_kernel(x_ref, w1_ref, b1_ref, w2_ref, b2_ref, w3_ref, b3_ref, o_ref):
    # fc1 + relu: (tile_b, 16) x (16, 128) on the MXU, f32 accumulation, f32 elementwise.
    x = x_ref[...].astype(jnp.bfloat16)
    h1 = jnp.dot(x, w1_ref[...], preferred_element_type=jnp.float32) + b1_ref[...]
    h1 = jnp.maximum(h1, 0.0)
    # quantum_layer + sigmoid: exp on the EUP; clamp avoids exp overflow to +inf for strongly
    # negative pre-activations; denominator reciprocal on the EUP (approx vrcp).
    z = jnp.dot(h1.astype(jnp.bfloat16), w2_ref[...],
                preferred_element_type=jnp.float32) + b2_ref[...]
    z = jnp.maximum(z, -30.0)
    h2 = pl.reciprocal(1.0 + jnp.exp(-z), approx=True)
    # fc2 (no activation): (tile_b, 128) x (128, 8); the narrow 8-lane store is negligible
    # next to the 16x saved writeback DMA in this memory-bound regime.
    o_ref[...] = (jnp.dot(h2.astype(jnp.bfloat16), w3_ref[...],
                          preferred_element_type=jnp.float32)
                  + b3_ref[...]).astype(o_ref.dtype)


def quantumnet_forward(x, params, *, tile_b=4096):
    """x: [B, input_size] float32 (or bfloat16). params: lane-padded bf16 weights, f32 biases.

    Returns [B, output_size] float32.
    """
    w1, b1, w2, b2, w3, b3 = params
    B, input_size = x.shape
    assert input_size == w1.shape[0]
    hid_pad = w2.shape[1]
    output_size = w3.shape[1]

    # Tile the batch; cap the tile at the (8-rounded) batch and keep it a multiple of 8 so the
    # block's second-minor dim satisfies the (8, 128) layout rule. Overhang rows in the last
    # block are handled by Pallas masking (rows are independent through the matmuls).
    tile_b = _round_up(max(8, min(tile_b, _round_up(B, 8))), 8)
    grid = (pl.cdiv(B, tile_b),)

    def resident(arr):  # weights / biases stay in VMEM for all grid steps
        return pl.BlockSpec(arr.shape, lambda i: (0, 0),
                            memory_space=pltpu.MemorySpace.VMEM)

    # flops follow the 128-wide padded matmuls actually issued; bytes follow the de-padded I/O.
    flops = 2 * B * (input_size * hid_pad + hid_pad * hid_pad + hid_pad * output_size)
    bytes_accessed = (int(x.size) * x.dtype.itemsize + B * output_size * 4
                      + sum(int(a.size) * a.dtype.itemsize for a in (w1, b1, w2, b2, w3, b3)))

    return pl.pallas_call(
        quantumnet_kernel,
        out_shape=jax.ShapeDtypeStruct((B, output_size), jnp.float32),
        grid_spec=pltpu.PrefetchScalarGridSpec(
            num_scalar_prefetch=0,
            grid=grid,
            in_specs=[pl.BlockSpec((tile_b, input_size), lambda i: (i, 0),
                                   memory_space=pltpu.MemorySpace.VMEM),
                      resident(w1), resident(b1),
                      resident(w2), resident(b2),
                      resident(w3), resident(b3)],
            out_specs=pl.BlockSpec((tile_b, output_size), lambda i: (i, 0),
                                   memory_space=pltpu.MemorySpace.VMEM)),
        compiler_params=pltpu.CompilerParams(
            dimension_semantics=("parallel",),
            vmem_limit_bytes=32 * 1024 * 1024),
        cost_estimate=pl.CostEstimate(flops=flops,
                                      transcendentals=B * hid_pad,
                                      bytes_accessed=bytes_accessed),
    )(x, w1, b1, w2, b2, w3, b3)


def init_params(key, input_size=16, hidden_size=64, output_size=8):
    # Deterministic init mimicking nn.Linear default (uniform +/- 1/sqrt(fan_in)).
    # Weights are stored [in, out] (transposed vs. PyTorch's [out, in]) in bf16; biases are
    # (1, out) f32 rows. Only the hidden dim is zero-padded to the 128-lane width -- the
    # input (16) and output (8) dims stay narrow so the kernel's HBM I/O stays narrow.
    hid_p = _round_up(hidden_size, LANE)
    k = jax.random.split(key, 6)

    def lin(kw, kb, fan_in, fan_out, rows_p, cols_p):
        bound = 1.0 / (float(fan_in) ** 0.5)
        w = jax.random.uniform(kw, (fan_in, fan_out), jnp.float32, -bound, bound)
        b = jax.random.uniform(kb, (fan_out,), jnp.float32, -bound, bound)
        w_p = jnp.zeros((rows_p, cols_p), jnp.float32).at[:fan_in, :fan_out].set(w)
        b_p = jnp.zeros((1, cols_p), jnp.float32).at[0, :fan_out].set(b)
        return w_p.astype(jnp.bfloat16), b_p

    w1, b1 = lin(k[0], k[1], input_size, hidden_size, input_size, hid_p)     # (16, 128)
    w2, b2 = lin(k[2], k[3], hidden_size, hidden_size, hid_p, hid_p)         # (128, 128)
    w3, b3 = lin(k[4], k[5], hidden_size, output_size, hid_p, output_size)   # (128, 8)
    return (w1, b1, w2, b2, w3, b3)


def reference_forward(x, params):
    # Pure-JAX reference mirroring the kernel's numerics (bf16 matmul inputs, f32 accumulation,
    # exact sigmoid). Hidden-dim zero padding is inert: relu(0)=0 feeds zero rows of w2, and the
    # sigmoid(0)=0.5 padded columns hit zero rows of w3.
    w1, b1, w2, b2, w3, b3 = params
    xb = x.astype(jnp.bfloat16)
    h1 = jnp.maximum(jnp.dot(xb, w1, preferred_element_type=jnp.float32) + b1, 0.0)
    h2 = jax.nn.sigmoid(jnp.dot(h1.astype(jnp.bfloat16), w2,
                                preferred_element_type=jnp.float32) + b2)
    return jnp.dot(h2.astype(jnp.bfloat16), w3, preferred_element_type=jnp.float32) + b3


if __name__ == "__main__":
    key = jax.random.PRNGKey(0)
    kx, kp = jax.random.split(key)

    input_size, hidden_size, output_size = 16, 64, 8
    params = init_params(kp, input_size, hidden_size, output_size)

    # Small demo batch (single grid step, block equals full batch).
    B = 8
    x = jax.random.normal(kx, (B, input_size), jnp.float32)
    out = jax.block_until_ready(quantumnet_forward(x, params))
    ref = reference_forward(x, params)
    assert out.shape == (B, output_size)
    assert jnp.allclose(out, ref, atol=2e-2, rtol=2e-2)

    # Larger batch exercising the multi-step batch grid and the masked overhang block
    # (200 rows with tile_b=128 -> 2 grid steps, second block overhangs by 56 rows).
    B2 = 200
    x2 = jax.random.normal(kx, (B2, input_size), jnp.float32)
    out2 = jax.block_until_ready(quantumnet_forward(x2, params, tile_b=128))
    ref2 = reference_forward(x2, params)
    assert out2.shape == (B2, output_size)
    assert jnp.allclose(out2, ref2, atol=2e-2, rtol=2e-2)

    print("KERNEL_OK")
</pallas_src>

<mosaic_0001>
module attributes {stable_mosaic.version = 11 : i64} {
  func.func @quantumnet_kernel(%arg0: i32, %arg1: memref<8x16xf32, #tpu.memory_space<vmem>>, %arg2: memref<16x128xbf16, #tpu.memory_space<vmem>>, %arg3: memref<1x128xf32, #tpu.memory_space<vmem>>, %arg4: memref<128x128xbf16, #tpu.memory_space<vmem>>, %arg5: memref<1x128xf32, #tpu.memory_space<vmem>>, %arg6: memref<128x8xbf16, #tpu.memory_space<vmem>>, %arg7: memref<1x8xf32, #tpu.memory_space<vmem>>, %arg8: memref<8x8xf32, #tpu.memory_space<vmem>>) attributes {dimension_semantics = [#tpu.dimension_semantics<parallel>], iteration_bounds = array<i64: 1>, scalar_prefetch = 0 : i64, scratch_operands = 0 : i64, tpu.core_type = #tpu.core_type<tc>, window_params = [{transform_indices = @transform_0, window_bounds = array<i64: 8, 16>}, {pipeline_mode = #tpu.pipeline_mode<synchronous>, transform_indices = @transform_1, window_bounds = array<i64: 16, 128>}, {pipeline_mode = #tpu.pipeline_mode<synchronous>, transform_indices = @transform_2, window_bounds = array<i64: 1, 128>}, {pipeline_mode = #tpu.pipeline_mode<synchronous>, transform_indices = @transform_3, window_bounds = array<i64: 128, 128>}, {pipeline_mode = #tpu.pipeline_mode<synchronous>, transform_indices = @transform_4, window_bounds = array<i64: 1, 128>}, {pipeline_mode = #tpu.pipeline_mode<synchronous>, transform_indices = @transform_5, window_bounds = array<i64: 128, 8>}, {pipeline_mode = #tpu.pipeline_mode<synchronous>, transform_indices = @transform_6, window_bounds = array<i64: 1, 8>}, {transform_indices = @transform_7, window_bounds = array<i64: 8, 8>}]} {
    %c0 = arith.constant 0 : index
    %c0_0 = arith.constant 0 : index
    %0 = vector.load %arg1[%c0, %c0_0] : memref<8x16xf32, #tpu.memory_space<vmem>>, vector<8x16xf32>
    %1 = arith.truncf %0 : vector<8x16xf32> to vector<8x16xbf16>
    %c0_1 = arith.constant 0 : index
    %c0_2 = arith.constant 0 : index
    %2 = vector.load %arg2[%c0_1, %c0_2] : memref<16x128xbf16, #tpu.memory_space<vmem>>, vector<16x128xbf16>
    %cst = arith.constant dense<0.000000e+00> : vector<8x128xf32>
    %3 = tpu.matmul %1, %2, %cst {dimension_numbers = #tpu.dot_dimension_numbers<[1], [0], [0], [1], [0, 0, 1, 1], [], []>} : vector<8x16xbf16>, vector<16x128xbf16>, vector<8x128xf32> -> vector<8x128xf32>
    %c0_3 = arith.constant 0 : index
    %c0_4 = arith.constant 0 : index
    %4 = vector.load %arg3[%c0_3, %c0_4] : memref<1x128xf32, #tpu.memory_space<vmem>>, vector<1x128xf32>
    %5 = vector.broadcast %4 : vector<1x128xf32> to vector<8x128xf32>
    %6 = arith.addf %3, %5 : vector<8x128xf32>
    %cst_5 = arith.constant 0.000000e+00 : f32
    %7 = vector.broadcast %cst_5 : f32 to vector<8x128xf32>
    %8 = arith.maximumf %6, %7 : vector<8x128xf32>
    %9 = arith.truncf %8 : vector<8x128xf32> to vector<8x128xbf16>
    %c0_6 = arith.constant 0 : index
    %c0_7 = arith.constant 0 : index
    %10 = vector.load %arg4[%c0_6, %c0_7] : memref<128x128xbf16, #tpu.memory_space<vmem>>, vector<128x128xbf16>
    %cst_8 = arith.constant dense<0.000000e+00> : vector<8x128xf32>
    %11 = tpu.matmul %9, %10, %cst_8 {dimension_numbers = #tpu.dot_dimension_numbers<[1], [0], [0], [1], [0, 0, 1, 1], [], []>} : vector<8x128xbf16>, vector<128x128xbf16>, vector<8x128xf32> -> vector<8x128xf32>
    %c0_9 = arith.constant 0 : index
    %c0_10 = arith.constant 0 : index
    %12 = vector.load %arg5[%c0_9, %c0_10] : memref<1x128xf32, #tpu.memory_space<vmem>>, vector<1x128xf32>
    %13 = vector.broadcast %12 : vector<1x128xf32> to vector<8x128xf32>
    %14 = arith.addf %11, %13 : vector<8x128xf32>
    %cst_11 = arith.constant -3.000000e+01 : f32
    %15 = vector.broadcast %cst_11 : f32 to vector<8x128xf32>
    %16 = arith.maximumf %14, %15 : vector<8x128xf32>
    %cst_12 = arith.constant 0.000000e+00 : f32
    %17 = vector.broadcast %cst_12 : f32 to vector<8x128xf32>
    %18 = arith.subf %17, %16 : vector<8x128xf32>
    %19 = math.exp %18 : vector<8x128xf32>
    %cst_13 = arith.constant 1.000000e+00 : f32
    %20 = vector.broadcast %cst_13 : f32 to vector<8x128xf32>
    %21 = arith.addf %20, %19 : vector<8x128xf32>
    %22 = tpu.reciprocal %21 {approx = true} : vector<8x128xf32> -> vector<8x128xf32>
    %23 = arith.truncf %22 : vector<8x128xf32> to vector<8x128xbf16>
    %c0_14 = arith.constant 0 : index
    %c0_15 = arith.constant 0 : index
    %24 = vector.load %arg6[%c0_14, %c0_15] : memref<128x8xbf16, #tpu.memory_space<vmem>>, vector<128x8xbf16>
    %cst_16 = arith.constant dense<0.000000e+00> : vector<8x8xf32>
    %25 = tpu.matmul %23, %24, %cst_16 {dimension_numbers = #tpu.dot_dimension_numbers<[1], [0], [0], [1], [0, 0, 1, 1], [], []>} : vector<8x128xbf16>, vector<128x8xbf16>, vector<8x8xf32> -> vector<8x8xf32>
    %c0_17 = arith.constant 0 : index
    %c0_18 = arith.constant 0 : index
    %26 = vector.load %arg7[%c0_17, %c0_18] : memref<1x8xf32, #tpu.memory_space<vmem>>, vector<1x8xf32>
    %27 = vector.broadcast %26 : vector<1x8xf32> to vector<8x8xf32>
    %28 = arith.addf %25, %27 : vector<8x8xf32>
    %c0_19 = arith.constant 0 : index
    %c0_20 = arith.constant 0 : index
    %29 = vector.load %arg8[%c0_19, %c0_20] : memref<8x8xf32, #tpu.memory_space<vmem>>, vector<8x8xf32>
    tpu.vector_store %arg8[%c0_19, %c0_20], %28 {strides = array<i32>} : memref<8x8xf32, #tpu.memory_space<vmem>>, vector<8x8xf32>,
    return
  }
  func.func @transform_0(%arg0: i32) -> (i32, i32) {
    %c0_i32 = arith.constant 0 : i32
    %c0_i32_0 = arith.constant 0 : i32
    return %arg0, %c0_i32 : i32, i32
  }
  func.func @transform_1(%arg0: i32) -> (i32, i32) {
    %c0_i32 = arith.constant 0 : i32
    %c0_i32_0 = arith.constant 0 : i32
    %c0_i32_1 = arith.constant 0 : i32
    return %c0_i32, %c0_i32_0 : i32, i32
  }
  func.func @transform_2(%arg0: i32) -> (i32, i32) {
    %c0_i32 = arith.constant 0 : i32
    %c0_i32_0 = arith.constant 0 : i32
    %c0_i32_1 = arith.constant 0 : i32
    return %c0_i32, %c0_i32_0 : i32, i32
  }
  func.func @transform_3(%arg0: i32) -> (i32, i32) {
    %c0_i32 = arith.constant 0 : i32
    %c0_i32_0 = arith.constant 0 : i32
    %c0_i32_1 = arith.constant 0 : i32
    return %c0_i32, %c0_i32_0 : i32, i32
  }
  func.func @transform_4(%arg0: i32) -> (i32, i32) {
    %c0_i32 = arith.constant 0 : i32
    %c0_i32_0 = arith.constant 0 : i32
    %c0_i32_1 = arith.constant 0 : i32
    return %c0_i32, %c0_i32_0 : i32, i32
  }
  func.func @transform_5(%arg0: i32) -> (i32, i32) {
    %c0_i32 = arith.constant 0 : i32
    %c0_i32_0 = arith.constant 0 : i32
    %c0_i32_1 = arith.constant 0 : i32
    return %c0_i32, %c0_i32_0 : i32, i32
  }
  func.func @transform_6(%arg0: i32) -> (i32, i32) {
    %c0_i32 = arith.constant 0 : i32
    %c0_i32_0 = arith.constant 0 : i32
    %c0_i32_1 = arith.constant 0 : i32
    return %c0_i32, %c0_i32_0 : i32, i32
  }
  func.func @transform_7(%arg0: i32) -> (i32, i32) {
    %c0_i32 = arith.constant 0 : i32
    %c0_i32_0 = arith.constant 0 : i32
    return %arg0, %c0_i32 : i32, i32
  }
}

</mosaic_0001>

<bundles_post_ra>
// kernel: tpu_custom_call.1
= control target key start
LH: loop header
LB: loop body
LE: loop exit
PB: predicated region body
PF: predicated region fallthrough
CT: control target
= control target key end

     0   :  { %12 = vsyncpa [#allocation3], 0  ;;  %s678_s0 = inlined_call_operand.vmem [shape: f32[8,16], index: 0, kind: input, shape index: {}]   ;;  %s679_s1 = inlined_call_operand.hbm [shape: bf16[16,128], index: 1, kind: input, shape index: {}]   ;;  %s680_s2 = inlined_call_operand.vmem [shape: f32[1,128], index: 2, kind: input, shape index: {}]   ;;  %s681_s3 = inlined_call_operand.vmem [shape: bf16[128,128], index: 3, kind: input, shape index: {}]   ;;  %s682_s4 = inlined_call_operand.hbm [shape: f32[1,128], index: 4, kind: input, shape index: {}]   ;;  %s683_s5 = inlined_call_operand.vmem [shape: bf16[128,8], index: 5, kind: input, shape index: {}]   ;;  %s684_s6 = inlined_call_operand.vmem [shape: f32[1,8], index: 6, kind: input, shape index: {}]   ;;  %s685_s7 = inlined_call_operand.hbm [shape: f32[8,8], index: 7, kind: output, shape index: {}]  }
   0x1   :  { %13 = vsyncpa [#allocation6], 0 }
   0x2   :  { %14 = vsyncpa [#allocation4], 0  ;;  %s545_s24 = smov [#allocation2]  }
   0x3   :  { %s22_s25 = sshll.u32 %s545_s24, 4  ;;  %s23_s25 = int_to_ptr.vmem [resolvable:$true] %s22_s25 }
   0x4   :  { %s487_s26 = scalar_lea.vmem %s23_s25, 128  ;;  %p492_p1 = scmp.lt.s32.totalorder %s23_s25, %s23_s25 }
   0x5   :  { %p488_p0 = scmp.ne.s32.totalorder %s23_s25, %s487_s26  ;;  %p493_p2 = scmp.lt.s32.totalorder %s487_s26, %s487_s26 }
   0x7   :  { %p494_p3 = por %p493_p2, %p492_p1 }
   0x9   :  { %p495_p4 = pnand %p494_p3, %p488_p0 }
   0xb   :  { %498 = shalt.err (!%p495_p4)
}
   0xc   :  { %s546_s27 = smov 64   ;;  %s547_s28 = smov 4  }
   0xd   :  { %28 = dma.hbm_to_vmem [thread:$0]  %s679_s1, 128, %s23_s25, [#allocation3], %s546_s27, %s546_s27, %s547_s28  }
   0xe   :  { %s548_s8 = smov [#allocation5]  }
   0xf   :  { %s39_s9 = sshll.u32 %s548_s8, 4  ;;  %s40_s9 = int_to_ptr.vmem [resolvable:$true] %s39_s9 }
  0x10   :  { %s507_s10 = scalar_lea.vmem %s40_s9, 16  ;;  %s511_s11 = scalar_lea.vmem %s40_s9, 32 }
  0x11   :  { %p508_p5 = scmp.ne.s32.totalorder %s40_s9, %s507_s10  ;;  %p512_p6 = scmp.lt.s32.totalorder %s40_s9, %s40_s9 }
  0x12   :  { %p513_p7 = scmp.lt.s32.totalorder %s511_s11, %s507_s10 }
  0x14   :  { %p514_p8 = por %p513_p7, %p512_p6 }
  0x16   :  { %p515_p9 = pnand %p514_p8, %p508_p5 }
  0x18   :  { %518 = shalt.err (!%p515_p9)
}
  0x19   :  { %42 = dma.hbm_to_vmem [thread:$0]  %s682_s4, 16, %s40_s9, [#allocation6]  }
  0x1a   :  { %539 = dma.done.wait [#allocation3], 128  }
  0x1b   :  { %540 = vsyncadd [#allocation3], 4294967168 }
  0x1c   :  { %541 = dma.done.wait [#allocation6], 16  }
  0x1d   :  { %542 = vsyncadd [#allocation6], 4294967280  ;;  %v549_v0 = vmov 0.0   ;;  %vm550_vm0 = vmmov 0   ;;  %v458_v1 = vld [vmem:[#allocation2] sm:$0xff]   ;;  %vm71_vm1 = vcmask 130048  }
  0x1e   :  { %405 = vmatprep.subr.bf16.mxu0 %v549_v0  ;;  %407 = vmatprep.mubr.msk.bf16.mxu0 %vm550_vm0, %v549_v0  ;;  %v54_v2 = vld [vmem:[%s678_s0] sm:$0xff]  ;;  %v459_v4 = vld [vmem:[%s681_s3 + $0x38] sm:$0xff]   ;;  %v460_v5 = vld [vmem:[%s681_s3 + $0x30] sm:$0xff]   ;;  %s551_s20 = smov [#allocation7]   ;;  %vm346_vm2 = vcmask 64512  }
  0x1f   :  { %411 = vmatprep.subr.bf16.mxu1 %v549_v0  ;;  %427 = vmatprep.mubr.msk.bf16.mxu1 %vm550_vm0, %v549_v0  ;;  %v55_v3 = vpack.c.bf16 %v54_v2, %v54_v2  ;;  %v461_v6 = vld [vmem:[%s681_s3 + $0x28] sm:$0xff]   ;;  %v462_v7 = vld [vmem:[%s681_s3 + $0x20] sm:$0xff]   ;;  %v463_v8 = vld [vmem:[%s681_s3 + $0x18] sm:$0xff]   ;;  %s354_s21 = sshll.u32 %s551_s20, 4  ;;  %s355_s21 = int_to_ptr.vmem [resolvable:$true] %s354_s21 }
  0x20   :  { %406 = vmatpush3.bf16.msra.mxu0 %v458_v1  ;;  %412 = vmatpush3.bf16.msra.mxu1 %v459_v4  ;;  %v464_v9 = vld [vmem:[%s681_s3 + $0x10] sm:$0xff]   ;;  %v465_v10 = vld [vmem:[%s681_s3 + $0x8] sm:$0xff]   ;;  %v466_v11 = vld [vmem:[%s681_s3] sm:$0xff]   ;;  %s519_s22 = scalar_lea.vmem %s355_s21, 128  ;;  %p524_p11 = scmp.lt.s32.totalorder %s355_s21, %s355_s21 }
  0x21   :  { %431 = vmatprep.subr.bf16.mxu0 %v549_v0  ;;  %413 = vmatprep.subr.bf16.mxu1 %v549_v0  ;;  %v364_v12 = vld [vmem:[%s680_s2] ss:$0 sm:$0xff]  ;;  %v467_v20 = vld [vmem:[%s683_s5 + $0x38] sm:$0xff]   ;;  %v468_v21 = vld [vmem:[%s683_s5 + $0x30] sm:$0xff]   ;;  %p520_p10 = scmp.ne.s32.totalorder %s355_s21, %s519_s22  ;;  %p525_p12 = scmp.lt.s32.totalorder %s519_s22, %s519_s22 }
  0x22   :  { %v469_v22 = vld [vmem:[%s683_s5 + $0x28] sm:$0xff]   ;;  %v470_v23 = vld [vmem:[%s683_s5 + $0x20] sm:$0xff]   ;;  %v471_v24 = vld [vmem:[%s683_s5 + $0x18] sm:$0xff]  }
  0x23   :  { %408 = vmatmul.mubr.msk.bf16.vlgmr.msra.gmra.mxu0 %vm71_vm1, %v55_v3  ;;  %v472_v25 = vld [vmem:[%s683_s5 + $0x10] sm:$0xff]   ;;  %v473_v26 = vld [vmem:[%s683_s5 + $0x8] sm:$0xff]   ;;  %v474_v27 = vld [vmem:[%s683_s5] sm:$0xff]   ;;  %p526_p13 = por %p525_p12, %p524_p11 }
  0x24   :  { %447 = vmatprep.mubr.msk.bf16.mxu0 %vm550_vm0, %v549_v0  ;;  %414 = vmatpush3.bf16.msra.mxu1 %v460_v5  ;;  %v367_v28 = vld [vmem:[#allocation5] ss:$0 sm:$0xff]  ;;  %v376_v41 = vld [vmem:[%s684_s6] ss:$0 sm:$0xff] }
  0x25   :  { %415 = vmatprep.subr.bf16.mxu1 %v549_v0  ;;  %432 = vmatpush3.bf16.msra.mxu0 %v467_v20  ;;  %p527_p0 = pnand %p526_p13, %p520_p10 }
  0x26   :  { %433 = vmatprep.subr.bf16.mxu0 %v549_v0 }
  0x28   :  { %416 = vmatpush3.bf16.msra.mxu1 %v461_v6 }
  0x29   :  { %417 = vmatprep.subr.bf16.mxu1 %v549_v0  ;;  %434 = vmatpush3.bf16.msra.mxu0 %v468_v21 }
  0x2a   :  { %435 = vmatprep.subr.bf16.mxu0 %v549_v0 }
  0x2c   :  { %418 = vmatpush3.bf16.msra.mxu1 %v462_v7 }
  0x2d   :  { %419 = vmatprep.subr.bf16.mxu1 %v549_v0  ;;  %436 = vmatpush3.bf16.msra.mxu0 %v469_v22 }
  0x2e   :  { %437 = vmatprep.subr.bf16.mxu0 %v549_v0 }
  0x30   :  { %420 = vmatpush3.bf16.msra.mxu1 %v463_v8 }
  0x31   :  { %421 = vmatprep.subr.bf16.mxu1 %v549_v0  ;;  %438 = vmatpush3.bf16.msra.mxu0 %v470_v23 }
  0x32   :  { %439 = vmatprep.subr.bf16.mxu0 %v549_v0 }
  0x34   :  { %422 = vmatpush3.bf16.msra.mxu1 %v464_v9 }
  0x35   :  { %423 = vmatprep.subr.bf16.mxu1 %v549_v0  ;;  %440 = vmatpush3.bf16.msra.mxu0 %v471_v24 }
  0x36   :  { %441 = vmatprep.subr.bf16.mxu0 %v549_v0 }
  0x38   :  { %424 = vmatpush3.bf16.msra.mxu1 %v465_v10 }
  0x39   :  { %425 = vmatprep.subr.bf16.mxu1 %v549_v0  ;;  %442 = vmatpush3.bf16.msra.mxu0 %v472_v25 }
  0x3a   :  { %443 = vmatprep.subr.bf16.mxu0 %v549_v0 }
  0x3c   :  { %426 = vmatpush3.bf16.msra.mxu1 %v466_v11 }
  0x3d   :  { %444 = vmatpush3.bf16.msra.mxu0 %v473_v26 }
  0x3e   :  { %445 = vmatprep.subr.bf16.mxu0 %v549_v0 }
  0x41   :  { %446 = vmatpush3.bf16.msra.mxu0 %v474_v27 }
  0xe3   :  { %v109_v13 = vpop.f32.mrf.mxu0 }
  0xe4   :  { %v110_v14 = vadd.f32 %v364_v12, %v109_v13 }
  0xe5   :  { %v409_v15 = vpop.f32.mrf.mxu0 }
  0xe6   :  { %v115_v16 = vmax.f32 %v110_v14, 0.0 }
  0xe7   :  { %v112_v17 = vpop.f32.mrf.mxu0 }
  0xe8   :  { %v116_v18 = vpack.c.bf16 %v115_v16, %v115_v16 }
  0xe9   :  { %v410_v19 = vpop.f32.mrf.mxu0 }
  0xea   :  { %428 = vmatmul.mubr.bf16.vlgmr.msra.gmra.mxu1 %v116_v18 }
 0x1aa   :  { %v222_v29 = vpop.f32.mrf.mxu1 }
 0x1ab   :  { %v223_v30 = vadd.f32 %v367_v28, %v222_v29 }
 0x1ac   :  { %v429_v31 = vpop.f32.mrf.mxu1 }
 0x1ad   :  { %v228_v32 = vmax.f32 %v223_v30, -30.0 }
 0x1ae   :  { %v225_v33 = vpop.f32.mrf.mxu1 }
 0x1af   :  { %v229_v34 = vsub.f32 0.0, %v228_v32 }
 0x1b0   :  { %v430_v35 = vpop.f32.mrf.mxu1 }
 0x1b1   :  { %v230_v36 = vmul.f32 1.442695, %v229_v34 }
 0x1b3   :  { %475 = vpow2.f32 %v230_v36 }
 0x1c0   :  { %v476_v37 = vpop.eup %475 }
 0x1c1   :  { %v232_v38 = vadd.f32 1.0, %v476_v37 }
 0x1c3   :  { %477 = vrcp.f32 %v232_v38 }
 0x1d0   :  { %v478_v39 = vpop.eup %477 }
 0x1d1   :  { %v234_v40 = vpack.c.bf16 %v478_v39, %v478_v39 }
 0x1d3   :  { %448 = vmatmul.mubr.bf16.vlgmr.msra.gmra.mxu0 %v234_v40 }
 0x293   :  { %v340_v42 = vpop.f32.mrf.mxu0 }
 0x294   :  { %v341_v43 = vadd.f32 %v376_v41, %v340_v42 }
 0x295   :  { %v449_v44 = vpop.f32.mrf.mxu0 }
 0x296   :  { %347 = vst.msk [vmem:[#allocation7] sm:$0xff] %vm346_vm2, %v341_v43 }
 0x297   :  { %v343_v45 = vpop.f32.mrf.mxu0 }
 0x298   :  { %530 = shalt.err (!%p527_p0)
}
 0x299   :  { %357 = dma.vmem_to_hbm [thread:$0]  %s355_s21, 128, %s685_s7, [#allocation4]   ;;  %v450_v46 = vpop.f32.mrf.mxu0 }
 0x29a   :  { %543 = dma.done.wait [#allocation4], 128  }
 0x29b   :  { %544 = vsyncadd [#allocation4], 4294967168 }
 0x29c   :  { %361 = vsyncpa [#allocation3], 1 }
 0x29d   :  { %362 = vsyncpa [#allocation6], 1 }
 0x29e   :  { %363 = vsyncpa [#allocation4], 1 }

</bundles_post_ra>
